<compile_context>
chip_gen: v7x
topology: tpu7x:2x2x1
jax: 0.10.0
libtpu: 0.0.40
codegen_flags: <defaults>
</compile_context>

<pallas_src>
import functools

import jax
import jax.numpy as jnp
from jax.experimental import pallas as pl
from jax.experimental.pallas import tpu as pltpu

EPS = 1e-5  # torch.nn.InstanceNorm2d default


def _reflect_taps(f, masks, W):
    """f: (C, H*W) row-major flat image (W minor).  masks: hoisted edge masks.

    Returns the 9 one-pixel reflect-padded shifted images, ordered
    t = kh*3 + kw, i.e. taps[t][c, y*W + x] == reflect_pad(f)[c, y+kh, x+kw].
    All shifts are XLU lane rotations (pltpu.roll); the cyclic wrap only ever
    lands on lanes covered by the edge-reflect masks.
    """
    C, HW = f.shape
    col_left, col_right, row_top, row_bot = masks

    up = pltpu.roll(f, W, 1)         # up[c, y, x] = f[c, y-1, x]  (wraps at y=0)
    dn = pltpu.roll(f, HW - W, 1)    # dn[c, y, x] = f[c, y+1, x]  (wraps at y=H-1)
    v_up = jnp.where(row_top, dn, up)   # reflect: row -1 -> row 1
    v_dn = jnp.where(row_bot, up, dn)   # reflect: row H  -> row H-2

    taps = []
    for v in (v_up, f, v_dn):                   # kh = 0, 1, 2
        r = pltpu.roll(v, 1, 1)                 # r[:, i] = v[:, i-1]
        l = pltpu.roll(v, HW - 1, 1)            # l[:, i] = v[:, i+1]
        taps.append(jnp.where(col_left, l, r))  # kw = 0: col -1 -> col 1
        taps.append(v)                          # kw = 1
        taps.append(jnp.where(col_right, r, l)) # kw = 2: col W -> col W-2
    return taps


def _conv3x3_instnorm(f, w_ref, masks, W, relu):
    """f: (Cin, H*W) f32.  w_ref: VMEM (Cout, 9*Cin) with column index
    (kh*3+kw)*Cin + cin.  reflect-pad -> conv3x3 -> InstanceNorm (-> ReLU)."""
    taps = _reflect_taps(f, masks, W)
    col = jnp.concatenate(taps, axis=0)                     # (9*Cin, HW) im2col slab
    conv = jnp.dot(w_ref[...], col,                         # (Cout, HW) on the MXU
                   preferred_element_type=jnp.float32,
                   precision=jax.lax.Precision.HIGHEST)
    # Conv bias omitted: InstanceNorm(affine=False) cancels it exactly.

    inv_hw = 1.0 / conv.shape[-1]
    mean = jnp.sum(conv, axis=1, keepdims=True) * inv_hw
    cent = conv - mean
    var = jnp.sum(cent * cent, axis=1, keepdims=True) * inv_hw  # two-pass variance
    y = cent * jax.lax.rsqrt(var + EPS)
    if relu:
        y = jnp.maximum(y, 0.0)
    return y


def resnet_block_kernel(x_ref, w1_ref, w2_ref, o_ref, *, W):
    # x_ref/o_ref: VMEM (1, C, H*W); w*_ref: VMEM (C, 9*C), resident across steps.
    x = x_ref[0].astype(jnp.float32)                          # (C, HW) lane-dense
    C, HW = x.shape

    # Hoisted edge masks, shared by both conv stages.
    lane = jax.lax.broadcasted_iota(jnp.int32, (C, HW), 1)
    xpos = lane % W
    masks = (xpos == 0, xpos == W - 1, lane < W, lane >= HW - W)

    h = _conv3x3_instnorm(x, w1_ref, masks, W, relu=True)     # conv1 -> IN -> ReLU
    y = _conv3x3_instnorm(h, w2_ref, masks, W, relu=False)    # conv2 -> IN
    o_ref[0] = (x + y).astype(o_ref.dtype)                    # residual


def resnet_block_forward(x_nchw, w1_oihw, b1, w2_oihw, b2):
    """x: (N, C, H, W) f32 NCHW.  w*: (Cout, Cin, 3, 3) OIHW.  b*: (C,).

    Biases are accepted for parameter-set fidelity with the PyTorch module but
    are not passed to the kernel: InstanceNorm2d(affine=False) subtracts the
    per-channel spatial mean, so the conv bias cancels exactly.
    """
    del b1, b2
    N, C, H, W = x_nchw.shape
    HW = H * W
    x = x_nchw.reshape(N, C, HW)                 # lane-dense, contiguous reshape

    # OIHW -> (Cout, kh, kw, Cin) -> (Cout, 9*Cin); col index = (kh*3+kw)*Cin + cin.
    w1m = jnp.transpose(w1_oihw, (0, 2, 3, 1)).reshape(C, 9 * C)
    w2m = jnp.transpose(w2_oihw, (0, 2, 3, 1)).reshape(C, 9 * C)

    img_spec = pl.BlockSpec((1, C, HW), lambda n: (n, 0, 0))
    w_spec = pl.BlockSpec((C, 9 * C), lambda n: (0, 0))  # same block -> stays resident

    out = pl.pallas_call(
        functools.partial(resnet_block_kernel, W=W),
        out_shape=jax.ShapeDtypeStruct((N, C, HW), x.dtype),
        grid=(N,),
        in_specs=[img_spec, w_spec, w_spec],
        out_specs=img_spec,
        compiler_params=pltpu.CompilerParams(
            dimension_semantics=("parallel",),   # batch images independent (v7x: 2 TCs)
        ),
    )(x, w1m, w2m)

    return out.reshape(N, C, H, W)


def _reference(x, w1, b1, w2, b2):
    """Pure-JAX NCHW reference of the same forward pass (for verification)."""
    def rpad(a):
        return jnp.pad(a, ((0, 0), (0, 0), (1, 1), (1, 1)), mode="reflect")

    def conv(a, w, b):
        y = jax.lax.conv_general_dilated(
            rpad(a), w, window_strides=(1, 1), padding="VALID",
            dimension_numbers=("NCHW", "OIHW", "NCHW"),
            precision=jax.lax.Precision.HIGHEST)
        return y + b.reshape(1, -1, 1, 1)

    def inorm(a):
        m = jnp.mean(a, axis=(2, 3), keepdims=True)
        v = jnp.mean((a - m) ** 2, axis=(2, 3), keepdims=True)
        return (a - m) * jax.lax.rsqrt(v + EPS)

    h = jax.nn.relu(inorm(conv(x, w1, b1)))
    h = inorm(conv(h, w2, b2))
    return x + h


if __name__ == "__main__":
    # ResnetBlock(dim=4, padding_type='reflect', norm_layer=InstanceNorm2d,
    #             use_dropout=False, use_bias=True); batch=2, 16x16 spatial.
    N, C, H, W = 2, 4, 16, 16

    key = jax.random.PRNGKey(0)
    kx, kw1, kb1, kw2, kb2 = jax.random.split(key, 5)

    x = jax.random.normal(kx, (N, C, H, W), dtype=jnp.float32)
    w1 = jax.random.normal(kw1, (C, C, 3, 3), dtype=jnp.float32) * 0.1
    b1 = jax.random.normal(kb1, (C,), dtype=jnp.float32) * 0.1
    w2 = jax.random.normal(kw2, (C, C, 3, 3), dtype=jnp.float32) * 0.1
    b2 = jax.random.normal(kb2, (C,), dtype=jnp.float32) * 0.1

    out = jax.block_until_ready(resnet_block_forward(x, w1, b1, w2, b2))
    ref = jax.block_until_ready(_reference(x, w1, b1, w2, b2))

    assert out.shape == (N, C, H, W)
    assert jnp.allclose(out, ref, atol=1e-4, rtol=1e-4), "mismatch vs reference"

    print("KERNEL_OK")
</pallas_src>

<mosaic_0001>
module attributes {stable_mosaic.version = 11 : i64} {
  func.func @resnet_block_kernel(%arg0: i32, %arg1: memref<1x4x256xf32, #tpu.memory_space<vmem>>, %arg2: memref<4x36xf32, #tpu.memory_space<vmem>>, %arg3: memref<4x36xf32, #tpu.memory_space<vmem>>, %arg4: memref<1x4x256xf32, #tpu.memory_space<vmem>>) attributes {dimension_semantics = [#tpu.dimension_semantics<parallel>], iteration_bounds = array<i64: 2>, scalar_prefetch = 0 : i64, scratch_operands = 0 : i64, tpu.core_type = #tpu.core_type<tc>, window_params = [{transform_indices = @transform_0, window_bounds = array<i64: 1, 4, 256>}, {pipeline_mode = #tpu.pipeline_mode<synchronous>, transform_indices = @transform_1, window_bounds = array<i64: 4, 36>}, {pipeline_mode = #tpu.pipeline_mode<synchronous>, transform_indices = @transform_2, window_bounds = array<i64: 4, 36>}, {transform_indices = @transform_3, window_bounds = array<i64: 1, 4, 256>}]} {
    %c0 = arith.constant 0 : index
    %c0_0 = arith.constant 0 : index
    %c0_1 = arith.constant 0 : index
    %0 = vector.load %arg1[%c0, %c0_0, %c0_1] : memref<1x4x256xf32, #tpu.memory_space<vmem>>, vector<1x4x256xf32>
    %1 = vector.shape_cast %0 : vector<1x4x256xf32> to vector<4x256xf32>
    %2 = tpu.iota {dimensions = array<i32: 1>} : vector<4x256xi32>
    %c16_i32 = arith.constant 16 : i32
    %c0_i32 = arith.constant 0 : i32
    %3 = arith.cmpi eq, %c16_i32, %c0_i32 : i32
    %c1_i32 = arith.constant 1 : i32
    %4 = arith.select %3, %c1_i32, %c16_i32 : i32
    %5 = vector.broadcast %4 : i32 to vector<4x256xi32>
    %6 = arith.remsi %2, %5 : vector<4x256xi32>
    %c0_i32_2 = arith.constant 0 : i32
    %7 = vector.broadcast %c0_i32_2 : i32 to vector<4x256xi32>
    %8 = arith.cmpi ne, %6, %7 : vector<4x256xi32>
    %c0_i32_3 = arith.constant 0 : i32
    %9 = vector.broadcast %c0_i32_3 : i32 to vector<4x256xi32>
    %10 = arith.cmpi slt, %6, %9 : vector<4x256xi32>
    %c0_i32_4 = arith.constant 0 : i32
    %11 = arith.cmpi slt, %4, %c0_i32_4 : i32
    %12 = vector.broadcast %11 : i1 to vector<4x256xi1>
    %13 = vector.broadcast %12 : vector<4x256xi1> to vector<4x256xi1>
    %14 = arith.xori %10, %13 : vector<4x256xi1>
    %15 = arith.andi %14, %8 : vector<4x256xi1>
    %16 = vector.broadcast %4 : i32 to vector<4x256xi32>
    %17 = arith.addi %6, %16 : vector<4x256xi32>
    %18 = arith.select %15, %17, %6 : vector<4x256xi1>, vector<4x256xi32>
    %c0_i32_5 = arith.constant 0 : i32
    %19 = vector.broadcast %c0_i32_5 : i32 to vector<4x256xi32>
    %20 = arith.cmpi eq, %18, %19 : vector<4x256xi32>
    %c15_i32 = arith.constant 15 : i32
    %21 = vector.broadcast %c15_i32 : i32 to vector<4x256xi32>
    %22 = arith.cmpi eq, %18, %21 : vector<4x256xi32>
    %c16_i32_6 = arith.constant 16 : i32
    %23 = vector.broadcast %c16_i32_6 : i32 to vector<4x256xi32>
    %24 = arith.cmpi slt, %2, %23 : vector<4x256xi32>
    %c240_i32 = arith.constant 240 : i32
    %25 = vector.broadcast %c240_i32 : i32 to vector<4x256xi32>
    %26 = arith.cmpi sge, %2, %25 : vector<4x256xi32>
    %c16_i32_7 = arith.constant 16 : i32
    %27 = tpu.dynamic_rotate %1 by %c16_i32_7 dim 1 : vector<4x256xf32>, i32 -> vector<4x256xf32>
    %c240_i32_8 = arith.constant 240 : i32
    %28 = tpu.dynamic_rotate %1 by %c240_i32_8 dim 1 : vector<4x256xf32>, i32 -> vector<4x256xf32>
    %29 = arith.select %24, %28, %27 : vector<4x256xi1>, vector<4x256xf32>
    %30 = arith.select %26, %27, %28 : vector<4x256xi1>, vector<4x256xf32>
    %c1_i32_9 = arith.constant 1 : i32
    %31 = tpu.dynamic_rotate %29 by %c1_i32_9 dim 1 : vector<4x256xf32>, i32 -> vector<4x256xf32>
    %c255_i32 = arith.constant 255 : i32
    %32 = tpu.dynamic_rotate %29 by %c255_i32 dim 1 : vector<4x256xf32>, i32 -> vector<4x256xf32>
    %33 = arith.select %20, %32, %31 : vector<4x256xi1>, vector<4x256xf32>
    %34 = arith.select %22, %31, %32 : vector<4x256xi1>, vector<4x256xf32>
    %c1_i32_10 = arith.constant 1 : i32
    %35 = tpu.dynamic_rotate %1 by %c1_i32_10 dim 1 : vector<4x256xf32>, i32 -> vector<4x256xf32>
    %c255_i32_11 = arith.constant 255 : i32
    %36 = tpu.dynamic_rotate %1 by %c255_i32_11 dim 1 : vector<4x256xf32>, i32 -> vector<4x256xf32>
    %37 = arith.select %20, %36, %35 : vector<4x256xi1>, vector<4x256xf32>
    %38 = arith.select %22, %35, %36 : vector<4x256xi1>, vector<4x256xf32>
    %c1_i32_12 = arith.constant 1 : i32
    %39 = tpu.dynamic_rotate %30 by %c1_i32_12 dim 1 : vector<4x256xf32>, i32 -> vector<4x256xf32>
    %c255_i32_13 = arith.constant 255 : i32
    %40 = tpu.dynamic_rotate %30 by %c255_i32_13 dim 1 : vector<4x256xf32>, i32 -> vector<4x256xf32>
    %41 = arith.select %20, %40, %39 : vector<4x256xi1>, vector<4x256xf32>
    %42 = arith.select %22, %39, %40 : vector<4x256xi1>, vector<4x256xf32>
    %43 = tpu.concatenate %33, %29, %34, %37, %1, %38, %41, %30, %42 in 0 : vector<4x256xf32>, vector<4x256xf32>, vector<4x256xf32>, vector<4x256xf32>, vector<4x256xf32>, vector<4x256xf32>, vector<4x256xf32>, vector<4x256xf32>, vector<4x256xf32> -> vector<36x256xf32>
    %c0_14 = arith.constant 0 : index
    %c0_15 = arith.constant 0 : index
    %44 = vector.load %arg2[%c0_14, %c0_15] : memref<4x36xf32, #tpu.memory_space<vmem>>, vector<4x36xf32>
    %cst = arith.constant dense<0.000000e+00> : vector<4x256xf32>
    %45 = tpu.matmul %44, %43, %cst {dimension_numbers = #tpu.dot_dimension_numbers<[1], [0], [0], [1], [0, 0, 1, 1], [], []>, precision = #tpu.contract_precision<fp32>} : vector<4x36xf32>, vector<36x256xf32>, vector<4x256xf32> -> vector<4x256xf32>
    %cst_16 = arith.constant dense<0.000000e+00> : vector<4xf32>
    %46 = vector.multi_reduction <add>, %45, %cst_16 [1] : vector<4x256xf32> to vector<4xf32>
    %47 = vector.shape_cast %46 : vector<4xf32> to vector<4x1xf32>
    %cst_17 = arith.constant 3.906250e-03 : f32
    %48 = vector.broadcast %cst_17 : f32 to vector<4x1xf32>
    %49 = arith.mulf %47, %48 : vector<4x1xf32>
    %50 = vector.broadcast %49 : vector<4x1xf32> to vector<4x256xf32>
    %51 = arith.subf %45, %50 : vector<4x256xf32>
    %52 = arith.mulf %51, %51 : vector<4x256xf32>
    %cst_18 = arith.constant dense<0.000000e+00> : vector<4xf32>
    %53 = vector.multi_reduction <add>, %52, %cst_18 [1] : vector<4x256xf32> to vector<4xf32>
    %54 = vector.shape_cast %53 : vector<4xf32> to vector<4x1xf32>
    %cst_19 = arith.constant 3.906250e-03 : f32
    %55 = vector.broadcast %cst_19 : f32 to vector<4x1xf32>
    %56 = arith.mulf %54, %55 : vector<4x1xf32>
    %cst_20 = arith.constant 9.99999974E-6 : f32
    %57 = vector.broadcast %cst_20 : f32 to vector<4x1xf32>
    %58 = arith.addf %56, %57 : vector<4x1xf32>
    %59 = math.rsqrt %58 : vector<4x1xf32>
    %60 = vector.broadcast %59 : vector<4x1xf32> to vector<4x256xf32>
    %61 = arith.mulf %51, %60 : vector<4x256xf32>
    %cst_21 = arith.constant 0.000000e+00 : f32
    %62 = vector.broadcast %cst_21 : f32 to vector<4x256xf32>
    %63 = arith.maximumf %61, %62 : vector<4x256xf32>
    %c16_i32_22 = arith.constant 16 : i32
    %64 = tpu.dynamic_rotate %63 by %c16_i32_22 dim 1 : vector<4x256xf32>, i32 -> vector<4x256xf32>
    %c240_i32_23 = arith.constant 240 : i32
    %65 = tpu.dynamic_rotate %63 by %c240_i32_23 dim 1 : vector<4x256xf32>, i32 -> vector<4x256xf32>
    %66 = arith.select %24, %65, %64 : vector<4x256xi1>, vector<4x256xf32>
    %67 = arith.select %26, %64, %65 : vector<4x256xi1>, vector<4x256xf32>
    %c1_i32_24 = arith.constant 1 : i32
    %68 = tpu.dynamic_rotate %66 by %c1_i32_24 dim 1 : vector<4x256xf32>, i32 -> vector<4x256xf32>
    %c255_i32_25 = arith.constant 255 : i32
    %69 = tpu.dynamic_rotate %66 by %c255_i32_25 dim 1 : vector<4x256xf32>, i32 -> vector<4x256xf32>
    %70 = arith.select %20, %69, %68 : vector<4x256xi1>, vector<4x256xf32>
    %71 = arith.select %22, %68, %69 : vector<4x256xi1>, vector<4x256xf32>
    %c1_i32_26 = arith.constant 1 : i32
    %72 = tpu.dynamic_rotate %63 by %c1_i32_26 dim 1 : vector<4x256xf32>, i32 -> vector<4x256xf32>
    %c255_i32_27 = arith.constant 255 : i32
    %73 = tpu.dynamic_rotate %63 by %c255_i32_27 dim 1 : vector<4x256xf32>, i32 -> vector<4x256xf32>
    %74 = arith.select %20, %73, %72 : vector<4x256xi1>, vector<4x256xf32>
    %75 = arith.select %22, %72, %73 : vector<4x256xi1>, vector<4x256xf32>
    %c1_i32_28 = arith.constant 1 : i32
    %76 = tpu.dynamic_rotate %67 by %c1_i32_28 dim 1 : vector<4x256xf32>, i32 -> vector<4x256xf32>
    %c255_i32_29 = arith.constant 255 : i32
    %77 = tpu.dynamic_rotate %67 by %c255_i32_29 dim 1 : vector<4x256xf32>, i32 -> vector<4x256xf32>
    %78 = arith.select %20, %77, %76 : vector<4x256xi1>, vector<4x256xf32>
    %79 = arith.select %22, %76, %77 : vector<4x256xi1>, vector<4x256xf32>
    %80 = tpu.concatenate %70, %66, %71, %74, %63, %75, %78, %67, %79 in 0 : vector<4x256xf32>, vector<4x256xf32>, vector<4x256xf32>, vector<4x256xf32>, vector<4x256xf32>, vector<4x256xf32>, vector<4x256xf32>, vector<4x256xf32>, vector<4x256xf32> -> vector<36x256xf32>
    %c0_30 = arith.constant 0 : index
    %c0_31 = arith.constant 0 : index
    %81 = vector.load %arg3[%c0_30, %c0_31] : memref<4x36xf32, #tpu.memory_space<vmem>>, vector<4x36xf32>
    %cst_32 = arith.constant dense<0.000000e+00> : vector<4x256xf32>
    %82 = tpu.matmul %81, %80, %cst_32 {dimension_numbers = #tpu.dot_dimension_numbers<[1], [0], [0], [1], [0, 0, 1, 1], [], []>, precision = #tpu.contract_precision<fp32>} : vector<4x36xf32>, vector<36x256xf32>, vector<4x256xf32> -> vector<4x256xf32>
    %cst_33 = arith.constant dense<0.000000e+00> : vector<4xf32>
    %83 = vector.multi_reduction <add>, %82, %cst_33 [1] : vector<4x256xf32> to vector<4xf32>
    %84 = vector.shape_cast %83 : vector<4xf32> to vector<4x1xf32>
    %cst_34 = arith.constant 3.906250e-03 : f32
    %85 = vector.broadcast %cst_34 : f32 to vector<4x1xf32>
    %86 = arith.mulf %84, %85 : vector<4x1xf32>
    %87 = vector.broadcast %86 : vector<4x1xf32> to vector<4x256xf32>
    %88 = arith.subf %82, %87 : vector<4x256xf32>
    %89 = arith.mulf %88, %88 : vector<4x256xf32>
    %cst_35 = arith.constant dense<0.000000e+00> : vector<4xf32>
    %90 = vector.multi_reduction <add>, %89, %cst_35 [1] : vector<4x256xf32> to vector<4xf32>
    %91 = vector.shape_cast %90 : vector<4xf32> to vector<4x1xf32>
    %cst_36 = arith.constant 3.906250e-03 : f32
    %92 = vector.broadcast %cst_36 : f32 to vector<4x1xf32>
    %93 = arith.mulf %91, %92 : vector<4x1xf32>
    %cst_37 = arith.constant 9.99999974E-6 : f32
    %94 = vector.broadcast %cst_37 : f32 to vector<4x1xf32>
    %95 = arith.addf %93, %94 : vector<4x1xf32>
    %96 = math.rsqrt %95 : vector<4x1xf32>
    %97 = vector.broadcast %96 : vector<4x1xf32> to vector<4x256xf32>
    %98 = arith.mulf %88, %97 : vector<4x256xf32>
    %99 = arith.addf %1, %98 : vector<4x256xf32>
    %c0_38 = arith.constant 0 : index
    %c0_39 = arith.constant 0 : index
    %c0_40 = arith.constant 0 : index
    %100 = vector.load %arg4[%c0_38, %c0_39, %c0_40] : memref<1x4x256xf32, #tpu.memory_space<vmem>>, vector<1x4x256xf32>
    %101 = vector.shape_cast %100 : vector<1x4x256xf32> to vector<4x256xf32>
    %102 = vector.shape_cast %99 : vector<4x256xf32> to vector<1x4x256xf32>
    tpu.vector_store %arg4[%c0_38, %c0_39, %c0_40], %102 {strides = array<i32>} : memref<1x4x256xf32, #tpu.memory_space<vmem>>, vector<1x4x256xf32>,
    return
  }
  func.func @transform_0(%arg0: i32) -> (i32, i32, i32) {
    %c0_i32 = arith.constant 0 : i32
    %c0_i32_0 = arith.constant 0 : i32
    %c0_i32_1 = arith.constant 0 : i32
    return %arg0, %c0_i32, %c0_i32_0 : i32, i32, i32
  }
  func.func @transform_1(%arg0: i32) -> (i32, i32) {
    %c0_i32 = arith.constant 0 : i32
    %c0_i32_0 = arith.constant 0 : i32
    %c0_i32_1 = arith.constant 0 : i32
    return %c0_i32, %c0_i32_0 : i32, i32
  }
  func.func @transform_2(%arg0: i32) -> (i32, i32) {
    %c0_i32 = arith.constant 0 : i32
    %c0_i32_0 = arith.constant 0 : i32
    %c0_i32_1 = arith.constant 0 : i32
    return %c0_i32, %c0_i32_0 : i32, i32
  }
  func.func @transform_3(%arg0: i32) -> (i32, i32, i32) {
    %c0_i32 = arith.constant 0 : i32
    %c0_i32_0 = arith.constant 0 : i32
    %c0_i32_1 = arith.constant 0 : i32
    return %arg0, %c0_i32, %c0_i32_0 : i32, i32, i32
  }
}

</mosaic_0001>

<bundles_post_ra>
// kernel: tpu_custom_call.1
= control target key start
LH: loop header
LB: loop body
LE: loop exit
PB: predicated region body
PF: predicated region fallthrough
CT: control target
= control target key end

     0   :  { %8 = vsyncpa [#allocation3], 0  ;;  %s2859_s0 = inlined_call_operand.hbm [shape: f32[2,4,256], index: 0, kind: input, shape index: {}]   ;;  %s2860_s1 = inlined_call_operand.hbm [shape: f32[4,36], index: 1, kind: input, shape index: {}]   ;;  %s2861_s2 = inlined_call_operand.vmem [shape: f32[4,36], index: 2, kind: input, shape index: {}]   ;;  %s2862_s3 = inlined_call_operand.hbm [shape: f32[2,4,256], index: 3, kind: output, shape index: {}]  }
   0x1   :  { %10 = vsyncpa [#allocation3 + $0x1], 0 }
   0x2   :  { %11 = vsyncpa [#allocation6], 0 }
   0x3   :  { %12 = vsyncpa [#allocation4], 0 }
   0x4   :  { %14 = vsyncpa [#allocation4 + $0x1], 0  ;;  %s2096_s12 = smov 0   ;;  %s2098_s13 = smov 0  }
   0x5   :  { %s2100_s14 = smov 0   ;;  %s2102_s15 = smov 0  }
   0x6 LB: > { %s2117_s16 = sadd.s32 4294967295, %s2066_s15   ;;  %s1737_s17 = sadd.s32 4294967294, %s2066_s15   ;;  %s2066_s15 = sphi %s2102_s15, %s2894_s15   ;;  %s2062_s14 = sphi %s2100_s14, %s2893_s14   ;;  %s2058_s13 = sphi %s2098_s13, %s2892_s13   ;;  %s2054_s12 = sphi %s2096_s12, %s2891_s12  }
   0x7   : > { %p40_p0 = scmp.ne.s32.totalorder %s2058_s13, %s2054_s12  ;;  %p2863_p1 = scmp.eq.s32.totalorder %s2117_s16, 0 }
   0x8   : > { %p112_p3 = scmp.eq.s32.totalorder %s1737_s17, 1  ;;  %p1738_p5 = scmp.ge.s32.totalorder %s2066_s15, 1 }
   0x9   : > { %p2126_p4 = por %p2863_p1, %p40_p0  ;;  %p119_p7 = scmp.lt.s32.totalorder %s2066_s15, 3 }
   0xa   : > { %p2131_p6 = por %p112_p3, %p40_p0  ;;  %s2068_s21 = smov [#allocation5]  }
   0xb   : > { %s2866_s18 = scalar_select %p2126_p4, 1, 0 }
   0xc   : > { %s2867_s19 = scalar_select %p2131_p6, 1, 0 }
   0xd   : > { %p2136_p8 = pnand %p1738_p5, %p119_p7  ;;  %s132_s22 = sshll.u32 %s2068_s21, 4  ;;  %s133_s22 = int_to_ptr.vmem [resolvable:$true] %s132_s22 }
   0xe   : > { %s2144_s23 = sadd.s32 1, %s2066_s15   ;;  %s27_s27 = sadd.s32 1, %s2062_s14 }
   0xf   : > { %s2868_s20 = scalar_select %p2136_p8, 1, 0 }
  0x10   : > { %p1879_p10 = pneg %p2136_p8  ;;  %s24_s25 = ssub.s32 %s2066_s15, %s2144_s23 }
  0x11   : > { %p2154_p12 = scmp.eq.s32.totalorder %s24_s25, 0  ;;  %s1938_s30 = scalar_lea.hbm %s2860_s1, 64 }
  0x12   : > { %p2148_p11 = pnand %p1879_p10, %p2863_p1  ;;  %p1939_p0 = scmp.ne.s32.totalorder %s2860_s1, %s1938_s30 }
  0x13   : > { %s2870_s26 = scalar_select %p2154_p12, 1, 0 }
  0x14   : > { %p1940_p3 = pneg %p2148_p11  ;;  %p1945_p10 = scmp.lt.u32.totalorder %s1938_s30, %s2860_s1 }
  0x16   : > { %p1941_p5 = pnand %p1940_p3, %p1939_p0 }
  0x18   : > { %p1942_p7 = pneg %p1941_p5 }
  0x1a   : > { %p1947_p9 = pnand %p1945_p10, %p1942_p7 }
  0x1c   : > { %1950 = shalt.err (!%p1947_p9)
}
  0x1d   : > { %s1951_s8 = scalar_lea.vmem %s133_s22, 64  ;;  %p1959_p6 = scmp.lt.s32.totalorder %s133_s22, %s133_s22 }
  0x1e   : > { %p1952_p1 = scmp.ne.s32.totalorder %s133_s22, %s1951_s8  ;;  %p1960_p4 = scmp.lt.s32.totalorder %s1951_s8, %s1951_s8 }
  0x20   : > { %p1954_p2 = pnand %p1952_p1, %p1940_p3  ;;  %p1961_p8 = por %p1960_p4, %p1959_p6 }
  0x22   : > { %p1955_p13 = pneg %p1954_p2 }
  0x24   : > { %p1962_p12 = pnand %p1961_p8, %p1955_p13 }
  0x26   : > { %1965 = shalt.err (!%p1962_p12)
}
  0x27   : > { %1882 = dma.hbm_to_vmem [thread:$0]  (!%p2148_p11), %s2860_s1, 64, %s133_s22, [#allocation6]  }
  0x28   : > { %p2871_p1 = scmp.ne.s32.totalorder %s2870_s26, 0  ;;  %p35_p2 = scmp.eq.s32.totalorder %s2066_s15, 0 }
  0x29   : > { %p2872_p4 = scmp.ne.s32.totalorder %s2062_s14, %s2058_s13  ;;  %p2873_p6 = scmp.eq.s32.totalorder %s2117_s16, 1 }
  0x2a   : > { %s2180_s11 = scalar_select %p2871_p1, %s2062_s14, %s27_s27  }
  0x2b   : > { %p2188_p8 = por %p2873_p6, %p2872_p4  ;;  %p1892_p9 = scmp.lt.s32.totalorder %s2066_s15, 2 }
  0x2c   : > { %s146_s21 = sand.u32 1, %s2062_s14   ;;  %p2875_p12 = pmov %p2872_p4 }
  0x2d   : > { %s1741_s24 = sshll.u32 %s146_s21, 3  ;;  %s1753_s25 = sshll.u32 %s2066_s15, 7 }
  0x2e   : > { %p36_p13 = por %p35_p2, %p2875_p12  ;;  %s2201_s22 = scalar_lea.hbm %s2859_s0, %s1753_s25 }
  0x2f   : > { %s150_s26 = scalar_lea.vmem [#allocation2], %s1741_s24  ;;  %s147_s4 = scalar_lea.sflag [#allocation3], %s146_s21 }
  0x30   : > { %s158_s27 = sshll.u32 %s150_s26, 4  ;;  %p2203_p11 = pnand %p1892_p9, %p36_p13  ;;  %s2207_s27 = int_to_ptr.vmem [resolvable:$true] %s158_s27 }
  0x31   : > { %s1966_s5 = scalar_lea.hbm %s2201_s22, 128  ;;  %s1971_s8 = scalar_lea.hbm %s2859_s0, 256 }
  0x32   : > { %p1967_p0 = scmp.ne.s32.totalorder %s2201_s22, %s1966_s5  ;;  %p1968_p3 = pneg %p2203_p11 }
  0x33   : > { %p1972_p10 = scmp.lt.u32.totalorder %s2201_s22, %s2859_s0  ;;  %p1973_p1 = scmp.lt.u32.totalorder %s1971_s8, %s1966_s5 }
  0x34   : > { %p1969_p5 = pnand %p1968_p3, %p1967_p0  ;;  %p1975_p4 = scmp.lt.u32.totalorder %s1966_s5, %s2201_s22 }
  0x35   : > { %p1974_p2 = por %p1973_p1, %p1972_p10 }
  0x36   : > { %p1970_p7 = pneg %p1969_p5 }
  0x37   : > { %p1976_p6 = por %p1975_p4, %p1974_p2 }
  0x39   : > { %p1977_p9 = pnand %p1976_p6, %p1970_p7 }
  0x3b   : > { %1980 = shalt.err (!%p1977_p9)
}
  0x3c   : > { %s1981_s21 = scalar_lea.vmem %s2207_s27, 128  ;;  %s2069_s24 = smov [#allocation2]  }
  0x3d   : > { %p1982_p12 = scmp.ne.s32.totalorder %s2207_s27, %s1981_s21  ;;  %s1986_s25 = sshll.u32 %s2069_s24, 4  ;;  %s1987_s25 = int_to_ptr.vmem [resolvable:$false] %s1986_s25 }
  0x3e   : > { %s1988_s28 = scalar_lea.vmem %s1987_s25, 256  ;;  %p1989_p5 = scmp.lt.s32.totalorder %s2207_s27, %s1987_s25 }
  0x3f   : > { %p1984_p13 = pnand %p1982_p12, %p1968_p3  ;;  %p1990_p10 = scmp.lt.s32.totalorder %s1988_s28, %s1981_s21 }
  0x41   : > { %p1985_p0 = pneg %p1984_p13  ;;  %p1991_p1 = por %p1990_p10, %p1989_p5 }
  0x43   : > { %p1992_p2 = pnand %p1991_p1, %p1985_p0 }
  0x45   : > { %1995 = shalt.err (!%p1992_p2)
}
  0x46   : > { %1886 = dma.hbm_to_vmem [thread:$0]  (!%p2203_p11), %s2201_s22, 128, %s2207_s27, %s147_s4  }
  0x47   : > { %p2877_p7 = scmp.ne.s32.totalorder %s2868_s20, 0 }
  0x48   : > { %s2237_s29 = sand.u32 (!%p2877_p7), 1, %s2058_s13   ;;  %p2878_p3 = scmp.ne.s32.totalorder (!%p2877_p7), %s2866_s18, 0 }
  0x49   : > { %167 = sbr.rel (%p2877_p7) target bundleno = 1781 (0x6f5), region = 32  ;;  %s1745_s26 = sshll.u32 (!%p2877_p7), %s2237_s29, 3 }
  0x4a   : > { %s170_s5 = scalar_lea.sflag (!%p2877_p7), [#allocation3], %s2237_s29  ;;  %s173_s6 = scalar_lea.vmem (!%p2877_p7), [#allocation2], %s1745_s26 }
  0x50   : > { %2041 = dma.done.wait (%p2878_p3), %s170_s5, 128  }
  0x51   : > { %2043 = vsyncadd (%p2878_p3), %s170_s5, 4294967168  ;;  %p2879_p11 = scmp.eq.s32.totalorder %s2117_s16, 0 }
  0x53   : > { %2045 = dma.done.wait (%p2879_p11), [#allocation6], 64   ;;  %p2880_p4 = pmov %p2879_p11 }
  0x54   : > { %v2251_v0 = vld [vmem:[%s173_s6] sm:$0xff]  ;;  %s2070_s20 = smov 112   ;;  %s2071_s22 = smov 16   ;;  %v201_v2 = vlaneseq  ;;  %v2074_v15 = vmov 0.0   ;;  %v339_v26 = vld [vmem:[#allocation5] sm:$0xf] }
  0x55   : > { %2047 = vsyncadd (%p2880_p4), [#allocation6], 4294967232  ;;  %245 = vrot.lane.b32.xlu1 %v2251_v0, %s2070_s20  ;;  %239 = vrot.lane.b32.xlu0 %v2251_v0, %s2071_s22  ;;  %v2259_v1 = vcombine.high %v2251_v0, %v2251_v0  ;;  %s2072_s18 = smov 1   ;;  %s2073_s27 = smov 127   ;;  %vm340_vm6 = vcmask 293888   ;;  %vm330_vm8 = vcmask 1043456  }
  0x56   : > { %v2273_v3 = vand.u32 127, %v201_v2  ;;  %424 = vmatprep.mubr.f32.mxu0 %v2074_v15  ;;  %1121 = vmatprep.mubr.f32.mxu1 %v2074_v15  ;;  %v342_v31 = vsel %vm340_vm6, %v339_v26, 0  ;;  %s1754_s7 = sshll.u32 %s2117_s16, 7  ;;  %s199_s8 = scalar_lea.vmem [#allocation7], %s1745_s26 }
  0x57   : > { %v2346_v33 = vand.u32 4294901760, %v342_v31  ;;  %s1657_s9 = sshll.u32 %s199_s8, 4  ;;  %s2815_s24 = scalar_lea.hbm %s2862_s3, %s1754_s7  ;;  %s2817_s9 = int_to_ptr.vmem [resolvable:$true] %s1657_s9 }
  0x58   : > { %vm249_vm0 = vcmp.lt.s32.totalorder %v2273_v3, 112  ;;  %vm232_vm1 = vcmp.lt.s32.totalorder %v2273_v3, 16  ;;  %v2292_v11 = vadd.s32 128, %v2273_v3  ;;  %v208_v18 = vand.u32 15, %v2273_v3  ;;  %s1643_s25 = scalar_lea.sflag [#allocation4], %s2237_s29  ;;  %s1996_s28 = scalar_lea.vmem %s2817_s9, 128 }
  0x59   : > { %247 = vrot.lane.b32.xlu1 %v2259_v1, %s2070_s20  ;;  %241 = vrot.lane.b32.xlu0 %v2259_v1, %s2071_s22  ;;  %vm260_vm3 = vcmp.lt.s32.totalorder %v2273_v3, 1  ;;  %vm267_vm4 = vcmp.lt.s32.totalorder %v2273_v3, 127  ;;  %v2354_v39 = vsub.f32 %v342_v31, %v2346_v33  ;;  %p1997_p6 = scmp.ne.s32.totalorder %s2817_s9, %s1996_s28  ;;  %s2075_s16 = smov [#allocation7]  }
  0x5a   : > { %vm235_vm2 = vcmp.ge.s32.totalorder %v2292_v11, 240  ;;  %v215_v21 = vand.u32 15, %v2292_v11  ;;  %vm2327_vm5 = vcmp.eq.s32.totalorder %v208_v18, 15  ;;  %vm2356_vm9 = vcmp.eq.s32.totalorder %v208_v18, 0  ;;  %s2000_s26 = sshll.u32 %s2075_s16, 4  ;;  %s2001_s26 = int_to_ptr.vmem [resolvable:$false] %s2000_s26 }
  0x5b   : > { %v427_v48 = vand.u32 4294901760, %v2354_v39  ;;  %p1998_p9 = pnand %p1997_p6, %p2188_p8  ;;  %s2002_s5 = scalar_lea.vmem %s2001_s26, 256 }
  0x5c   : > { %vm2335_vm7 = vcmp.eq.s32.totalorder %v215_v21, 15  ;;  %vm2364_vm10 = vcmp.eq.s32.totalorder %v215_v21, 0  ;;  %p2003_p13 = scmp.lt.s32.totalorder %s2817_s9, %s2001_s26  ;;  %p2004_p0 = scmp.lt.s32.totalorder %s2002_s5, %s1996_s28 }
  0x5d   : > { %276 = vrot.lane.b32.xlu1 %v2259_v1, %s2072_s18  ;;  %274 = vrot.lane.b32.xlu0 %v2251_v0, %s2072_s18  ;;  %v2391_v59 = vsub.f32 %v2354_v39, %v427_v48  ;;  %p1999_p12 = pneg %p1998_p9 }
  0x5e   : > { %p2005_p5 = por %p2004_p0, %p2003_p13 }
  0x60   : > { %p2006_p10 = pnand %p2005_p5, %p1999_p12 }
  0x61   : > { %282 = vrot.lane.b32.xlu1 %v2259_v1, %s2073_s27  ;;  %280 = vrot.lane.b32.xlu0 %v2251_v0, %s2073_s27 }
  0xc7   : > { %v246_v4 = vpop.permute.xlu1 %245  ;;  %v240_v5 = vpop.permute.xlu0 %239 }
  0xcb   : > { %v248_v6 = vpop.permute.xlu1 %247  ;;  %v242_v7 = vpop.permute.xlu0 %241 }
  0xcc   : > { %v2279_v8 = vsel %vm249_vm0, %v246_v4, %v248_v6  ;;  %v2283_v9 = vsel %vm232_vm1, %v240_v5, %v242_v7  ;;  %v244_v10 = vsel %vm232_vm1, %v242_v7, %v240_v5  ;;  %v251_v13 = vsel %vm249_vm0, %v248_v6, %v246_v4 }
  0xcd   : > { %290 = vrot.lane.b32.xlu0 %v2279_v8, %s2072_s18  ;;  %258 = vrot.lane.b32.xlu1 %v2283_v9, %s2072_s18  ;;  %v2297_v12 = vsel %vm232_vm1, %v2279_v8, %v244_v10  ;;  %v2309_v14 = vsel %vm235_vm2, %v2283_v9, %v251_v13  ;;  %v326_v50 = vrot.slane %v2279_v8, 4  ;;  %v309_v51 = vrot.slane %v2283_v9, 4 }
  0xce   : > { %v308_v52 = vrot.slane %v2297_v12, 4  ;;  %v327_v53 = vrot.slane %v2309_v14, 4 }
  0xcf   : > { %v277_v16 = vpop.permute.xlu1 %276  ;;  %v275_v17 = vpop.permute.xlu0 %274 }
  0xd0   : > { %v279_v22 = vsel %vm260_vm3, %v277_v16, %v275_v17  ;;  %v278_v28 = vsel %vm260_vm3, %v275_v17, %v277_v16 }
  0xd1   : > { %256 = vrot.lane.b32.xlu0 %v2297_v12, %s2072_s18  ;;  %265 = vrot.lane.b32.xlu1 %v2283_v9, %s2073_s27 }
  0xd3   : > { %v283_v19 = vpop.permute.xlu1 %282  ;;  %v281_v20 = vpop.permute.xlu0 %280 }
  0xd4   : > { %v284_v24 = vsel %vm267_vm4, %v281_v20, %v283_v19  ;;  %v285_v29 = vsel %vm267_vm4, %v283_v19, %v281_v20 }
  0xd5   : > { %263 = vrot.lane.b32.xlu0 %v2297_v12, %s2073_s27  ;;  %292 = vrot.lane.b32.xlu1 %v2309_v14, %s2072_s18  ;;  %v288_v25 = vsel %vm2327_vm5, %v279_v22, %v284_v24  ;;  %v289_v32 = vsel %vm2335_vm7, %v278_v28, %v285_v29  ;;  %v286_v43 = vsel %vm2356_vm9, %v284_v24, %v279_v22 }
  0xd6   : > { %v320_v30 = vrot.slane %v288_v25, 4  ;;  %v321_v34 = vrot.slane %v289_v32, 4  ;;  %v287_v49 = vsel %vm2364_vm10, %v285_v29, %v278_v28  ;;  %v314_v54 = vrot.slane %v286_v43, 4 }
  0xd7   : > { %v315_v55 = vrot.slane %v287_v49, 4 }
  0xd8   : > { %v2350_v35 = vsel %vm330_vm8, %v2251_v0, %v320_v30  ;;  %v2362_v41 = vsel %vm330_vm8, %v2259_v1, %v321_v34 }
  0xd9   : > { %296 = vrot.lane.b32.xlu0 %v2279_v8, %s2073_s27  ;;  %298 = vrot.lane.b32.xlu1 %v2309_v14, %s2073_s27  ;;  %v360_v38 = vand.u32 4294901760, %v2350_v35  ;;  %v358_v46 = vand.u32 4294901760, %v2362_v41 }
  0xdb   : > { %v2374_v47 = vsub.f32 %v2350_v35, %v360_v38  ;;  %v2386_v58 = vsub.f32 %v2362_v41, %v358_v46 }
  0xdd   : > { %v468_v60 = vand.u32 4294901760, %v2374_v47  ;;  %v462_v43 = vand.u32 4294901760, %v2386_v58 }
 0x13f   : > { %v259_v36 = vpop.permute.xlu1 %258  ;;  %v291_v37 = vpop.permute.xlu0 %290 }
 0x143   : > { %v266_v44 = vpop.permute.xlu1 %265  ;;  %v257_v45 = vpop.permute.xlu0 %256 }
 0x144   : > { %v261_v61 = vsel %vm260_vm3, %v257_v45, %v259_v36  ;;  %v262_v62 = vsel %vm260_vm3, %v259_v36, %v257_v45 }
 0x147   : > { %v293_v56 = vpop.permute.xlu1 %292  ;;  %v264_v57 = vpop.permute.xlu0 %263 }
 0x148   : > { %v268_v63 = vsel %vm267_vm4, %v264_v57, %v266_v44  ;;  %v269_v1 = vsel %vm267_vm4, %v266_v44, %v264_v57  ;;  %v294_v12 = vsel %vm260_vm3, %v291_v37, %v293_v56  ;;  %v295_v13 = vsel %vm260_vm3, %v293_v56, %v291_v37 }
 0x149   : > { %v270_v2 = vsel %vm2356_vm9, %v268_v63, %v262_v62  ;;  %v271_v4 = vsel %vm2364_vm10, %v269_v1, %v261_v61  ;;  %v272_v5 = vsel %vm2327_vm5, %v262_v62, %v268_v63  ;;  %v273_v6 = vsel %vm2335_vm7, %v261_v61, %v269_v1 }
 0x14a   : > { %v331_v7 = vsel %vm330_vm8, %v270_v2, %v308_v52  ;;  %v332_v8 = vsel %vm330_vm8, %v271_v4, %v309_v51  ;;  %v333_v9 = vsel %vm330_vm8, %v272_v5, %v314_v54  ;;  %v334_v10 = vsel %vm330_vm8, %v273_v6, %v315_v55 }
 0x14b   : > { %v299_v14 = vpop.permute.xlu1 %298  ;;  %v297_v16 = vpop.permute.xlu0 %296  ;;  %v350_v17 = vand.u32 4294901760, %v332_v8  ;;  %v354_v18 = vand.u32 4294901760, %v334_v10  ;;  %v352_v21 = vand.u32 4294901760, %v331_v7  ;;  %v356_v22 = vand.u32 4294901760, %v333_v9 }
 0x14c   : > { %v300_v19 = vsel %vm267_vm4, %v297_v16, %v299_v14  ;;  %v301_v20 = vsel %vm267_vm4, %v299_v14, %v297_v16 }
 0x14d   : > { %v302_v24 = vsel %vm2356_vm9, %v300_v19, %v295_v13  ;;  %v303_v25 = vsel %vm2364_vm10, %v301_v20, %v294_v12  ;;  %v304_v26 = vsel %vm2327_vm5, %v295_v13, %v300_v19  ;;  %v305_v28 = vsel %vm2335_vm7, %v294_v12, %v301_v20 }
 0x14e   : > { %v337_v29 = vsel %vm330_vm8, %v302_v24, %v326_v50  ;;  %v338_v30 = vsel %vm330_vm8, %v303_v25, %v327_v53  ;;  %v345_v31 = vsel %vm330_vm8, %v304_v26, 0  ;;  %v348_v32 = vsel %vm330_vm8, %v305_v28, 0 }
 0x14f   : > { %v2434_v34 = vand.u32 4294901760, %v348_v32  ;;  %v2436_v36 = vpack.c.bf16 %v354_v18, %v350_v17  ;;  %v2438_v37 = vsub.f32 %v332_v8, %v350_v17  ;;  %v2441_v44 = vsub.f32 %v334_v10, %v354_v18 }
 0x150   : > { %v2443_v45 = vpack.c.bf16 %v356_v22, %v352_v21  ;;  %v2445_v49 = vsub.f32 %v331_v7, %v352_v21  ;;  %v2447_v50 = vsub.f32 %v333_v9, %v356_v22  ;;  %v2449_v51 = vand.u32 4294901760, %v345_v31 }
 0x151   : > { %v2452_v52 = vsub.f32 %v348_v32, %v2434_v34  ;;  %1756 = vmatprep.subr.bf16.mxu0 %v2436_v36  ;;  %v362_v53 = vand.u32 4294901760, %v338_v30  ;;  %v364_v54 = vand.u32 4294901760, %v337_v29  ;;  %v438_v55 = vand.u32 4294901760, %v2438_v37 }
 0x152   : > { %1758 = vmatpush1.bf16.msra.mxu0 %v2443_v45  ;;  %v450_v56 = vand.u32 4294901760, %v2441_v44  ;;  %v444_v57 = vand.u32 4294901760, %v2445_v49  ;;  %v456_v61 = vand.u32 4294901760, %v2447_v50  ;;  %v429_v13 = vand.u32 4294901760, %v2391_v59 }
 0x153   : > { %v2462_v62 = vpack.c.bf16 %v362_v53, %v358_v46  ;;  %v2464_v63 = vsub.f32 %v338_v30, %v362_v53  ;;  %v2468_v1 = vpack.c.bf16 %v364_v54, %v360_v38  ;;  %v2470_v2 = vsub.f32 %v337_v29, %v364_v54 }
 0x154   : > { %v439_v4 = vsub.f32 %v2438_v37, %v438_v55  ;;  %v451_v5 = vsub.f32 %v2441_v44, %v450_v56  ;;  %v445_v41 = vsub.f32 %v2445_v49, %v444_v57  ;;  %v457_v35 = vsub.f32 %v2447_v50, %v456_v61 }
 0x155   : > { %v2485_v38 = vsub.f32 %v345_v31, %v2449_v51  ;;  %1760 = vmatprep.subr.bf16.mxu0 %v2462_v62  ;;  %v463_v46 = vsub.f32 %v2386_v58, %v462_v43  ;;  %v474_v6 = vand.u32 4294901760, %v2464_v63  ;;  %v480_v7 = vand.u32 4294901760, %v2470_v2 }
 0x156   : > { %1762 = vmatpush1.bf16.msra.mxu0 %v2468_v1  ;;  %v440_v8 = vand.u32 4294901760, %v439_v4  ;;  %v452_v9 = vand.u32 4294901760, %v451_v5  ;;  %v446_v10 = vand.u32 4294901760, %v445_v41  ;;  %v458_v12 = vand.u32 4294901760, %v457_v35 }
 0x157   : > { %367 = vmatprep.subr.mxu0 %v2434_v34  ;;  %v475_v14 = vsub.f32 %v2464_v63, %v474_v6  ;;  %v481_v16 = vsub.f32 %v2470_v2, %v480_v7  ;;  %v486_v17 = vand.u32 4294901760, %v2452_v52  ;;  %v469_v18 = vsub.f32 %v2374_v47, %v468_v60 }
 0x158   : > { %v1763_v19 = vpack.c.bf16 %v452_v9, %v440_v8  ;;  %v464_v20 = vand.u32 4294901760, %v463_v46  ;;  %v1765_v22 = vpack.c.bf16 %v458_v12, %v446_v10  ;;  %v492_v25 = vand.u32 4294901760, %v2485_v38 }
 0x159   : > { %v476_v21 = vand.u32 4294901760, %v475_v14  ;;  %v482_v24 = vand.u32 4294901760, %v481_v16  ;;  %v487_v26 = vsub.f32 %v2452_v52, %v486_v17  ;;  %v470_v28 = vand.u32 4294901760, %v469_v18 }
 0x15a   : > { %369 = vmatpush1.msra.mxu0 %v2449_v51  ;;  %v493_v30 = vsub.f32 %v2485_v38, %v492_v25  ;;  %v1771_v53 = vpack.c.bf16 %v2441_v44, %v2438_v37  ;;  %v1773_v54 = vpack.c.bf16 %v2447_v50, %v2445_v49  ;;  %v1775_v4 = vpack.c.bf16 %v2464_v63, %v2386_v58 }
 0x15b   : > { %1764 = vmatprep.subr.bf16.mxu0 %v1763_v19  ;;  %430 = vmatmul.mubr.f32.vlgmr.msra.gmra.mrb[0].mxu0 %v429_v13  ;;  %v1767_v59 = vpack.c.bf16 %v476_v21, %v464_v20  ;;  %v1769_v29 = vpack.c.bf16 %v482_v24, %v470_v28  ;;  %v488_v31 = vand.u32 4294901760, %v487_v26  ;;  %v1777_v5 = vpack.c.bf16 %v2470_v2, %v2374_v47  ;;  %v1037_v28 = vld [vmem:[%s2861_s2] sm:$0xf] }
 0x15c   : > { %1766 = vmatpush1.bf16.msra.mxu0 %v1765_v22  ;;  %550 = vmatprep.mubr.f32.mxu0 %v2074_v15  ;;  %v494_v32 = vand.u32 4294901760, %v493_v30  ;;  %v1789_v63 = vpack.c.bf16 %v456_v61, %v444_v57  ;;  %v1791_v2 = vpack.c.bf16 %v474_v6, %v462_v43  ;;  %v1793_v37 = vpack.c.bf16 %v480_v7, %v468_v60 }
 0x15d   : > { %1768 = vmatprep.subr.bf16.mxu0 %v1767_v59 }
 0x160   : > { %1770 = vmatpush1.bf16.msra.mxu0 %v1769_v29 }
 0x161   : > { %489 = vmatprep.subr.mxu0 %v488_v31 }
 0x164   : > { %495 = vmatpush1.msra.mxu0 %v494_v32  ;;  %v1039_v32 = vsel %vm340_vm6, %v1037_v28, 0 }
 0x165   : > { %1772 = vmatprep.subr.bf16.mxu0 %v1771_v53  ;;  %552 = vmatmul.mubr.f32.vlgmr.msra.gmra.mrb[0].mxu0 %v2346_v33 }
 0x166   : > { %1774 = vmatpush1.bf16.msra.mxu0 %v1773_v54  ;;  %642 = vmatprep.mubr.f32.mxu0 %v2074_v15 }
 0x167   : > { %1776 = vmatprep.subr.bf16.mxu0 %v1775_v4 }
 0x16a   : > { %1778 = vmatpush1.bf16.msra.mxu0 %v1777_v5 }
 0x16b   : > { %584 = vmatprep.subr.mxu0 %v2452_v52  ;;  %v1787_v52 = vpack.c.bf16 %v450_v56, %v438_v55 }
 0x16e   : > { %587 = vmatpush1.msra.mxu0 %v2485_v38 }
 0x16f   : > { %1780 = vmatprep.subr.bf16.mxu0 %v2436_v36  ;;  %645 = vmatmul.mubr.f32.vlgmr.msra.gmra.mrb[0].mxu0 %v2354_v39 }
 0x170   : > { %1782 = vmatpush1.bf16.msra.mxu0 %v2443_v45  ;;  %725 = vmatprep.mubr.f32.mxu0 %v2074_v15 }
 0x171   : > { %1784 = vmatprep.subr.bf16.mxu0 %v2462_v62 }
 0x174   : > { %1786 = vmatpush1.bf16.msra.mxu0 %v2468_v1 }
 0x175   : > { %668 = vmatprep.subr.mxu0 %v2434_v34 }
 0x178   : > { %670 = vmatpush1.msra.mxu0 %v2449_v51 }
 0x179   : > { %1788 = vmatprep.subr.bf16.mxu0 %v1787_v52  ;;  %729 = vmatmul.mubr.f32.vlgmr.msra.gmra.mrb[0].mxu0 %v427_v48  ;;  %v2621_v52 = vand.u32 4294901760, %v1039_v32 }
 0x17a   : > { %1790 = vmatpush1.bf16.msra.mxu0 %v1789_v63  ;;  %829 = vmatprep.mubr.f32.mxu0 %v2074_v15 }
 0x17b   : > { %1792 = vmatprep.subr.bf16.mxu0 %v1791_v2 }
 0x17e   : > { %1794 = vmatpush1.bf16.msra.mxu0 %v1793_v37 }
 0x17f   : > { %770 = vmatprep.subr.mxu0 %v486_v17 }
 0x182   : > { %774 = vmatpush1.msra.mxu0 %v492_v25 }
 0x183   : > { %1796 = vmatprep.subr.bf16.mxu0 %v2436_v36  ;;  %831 = vmatmul.mubr.f32.vlgmr.msra.gmra.mrb[0].mxu0 %v2346_v33 }
 0x184   : > { %1798 = vmatpush1.bf16.msra.mxu0 %v2443_v45  ;;  %911 = vmatprep.mubr.f32.mxu0 %v2074_v15 }
 0x185   : > { %1800 = vmatprep.subr.bf16.mxu0 %v2462_v62 }
 0x188   : > { %1802 = vmatpush1.bf16.msra.mxu0 %v2468_v1 }
 0x189   : > { %854 = vmatprep.subr.mxu0 %v2434_v34 }
 0x18c   : > { %856 = vmatpush1.msra.mxu0 %v2449_v51 }
 0x18d   : > { %913 = vmatmul.mubr.f32.vlgmr.msra.gmra.mrb[0].mxu0 %v2346_v33 }
 0x260   : > { %v914_v39 = vpop.f32.mrb[0].mxu0 }
 0x261   : > { %v919_v47 = vsel %vm330_vm8, %v914_v39, 0.0  ;;  %v916_v48 = vpop.f32.mrb[1].mxu0 }
 0x262   : > { %v920_v58 = vsel %vm330_vm8, %v916_v48, 0.0 }
 0x263   : > { %v921_v60 = vadd.f32 %v920_v58, %v919_v47  ;;  %v2636_v47 = vsub.f32 %v1039_v32, %v2621_v52 }
 0x265   : > { %922 = vadd.xlane.f32.xlu0 %v921_v60 }
 0x2f2   : > { %v923_v36 = vpop.xlane.xlu0 %922 }
 0x2f3   : > { %v924_v43 = vmul.f32 0.00390625, %v923_v36 }
 0x2f5   : > { %v925_v44 = vsub.f32 %v914_v39, %v924_v43  ;;  %v926_v45 = vsub.f32 %v916_v48, %v924_v43 }
 0x2f7   : > { %v927_v49 = vmul.f32 %v925_v44, %v925_v44  ;;  %v928_v50 = vmul.f32 %v926_v45, %v926_v45 }
 0x2f9   : > { %v929_v34 = vsel %vm330_vm8, %v927_v49, 0.0  ;;  %v930_v51 = vsel %vm330_vm8, %v928_v50, 0.0 }
 0x2fa   : > { %v931_v55 = vadd.f32 %v930_v51, %v929_v34  ;;  %v1124_v34 = vand.u32 4294901760, %v2636_v47 }
 0x2fc   : > { %932 = vadd.xlane.f32.xlu1 %v931_v55  ;;  %v1125_v23 = vsub.f32 %v2636_v47, %v1124_v34 }
 0x389   : > { %v933_v33 = vpop.xlane.xlu1 %932 }
 0x38a   : > { %v934_v56 = vmul.f32 0.00390625, %v933_v33 }
 0x38c   : > { %v935_v57 = vadd.f32 1e-05, %v934_v56 }
 0x38e   : > { %1934 = vrsqrt.f32 %v935_v57 }
 0x398   : > { %v1935_v61 = vpop.eup %1934 }
 0x399   : > { %v938_v62 = vmul.f32 %v1935_v61, %v926_v45  ;;  %v937_v1 = vmul.f32 %v1935_v61, %v925_v44 }
 0x39b   : > { %v940_v41 = vmax.f32 %v938_v62, 0.0  ;;  %v939_v35 = vmax.f32 %v937_v1, 0.0 }
 0x39d   : > { %943 = vrot.lane.b32.xlu1 %v940_v41, %s2071_s22  ;;  %941 = vrot.lane.b32.xlu0 %v939_v35, %s2071_s22 }
 0x3a1   : > { %949 = vrot.lane.b32.xlu1 %v940_v41, %s2070_s20  ;;  %947 = vrot.lane.b32.xlu0 %v939_v35, %s2070_s20 }
 0x3a5   : > { %975 = vrot.lane.b32.xlu1 %v940_v41, %s2072_s18  ;;  %973 = vrot.lane.b32.xlu0 %v939_v35, %s2072_s18 }
 0x3a9   : > { %981 = vrot.lane.b32.xlu1 %v940_v41, %s2073_s27  ;;  %979 = vrot.lane.b32.xlu0 %v939_v35, %s2073_s27 }
 0x40f   : > { %v944_v38 = vpop.permute.xlu1 %943  ;;  %v942_v46 = vpop.permute.xlu0 %941 }
 0x410   : > { %v2565_v6 = vsel %vm232_vm1, %v942_v46, %v944_v38  ;;  %v946_v12 = vsel %vm232_vm1, %v944_v38, %v942_v46 }
 0x411   : > { %959 = vrot.lane.b32.xlu1 %v2565_v6, %s2072_s18  ;;  %v1008_v58 = vrot.slane %v2565_v6, 4 }
 0x413   : > { %v950_v7 = vpop.permute.xlu1 %949  ;;  %v948_v8 = vpop.permute.xlu0 %947 }
 0x414   : > { %v2571_v9 = vsel %vm249_vm0, %v948_v8, %v950_v7  ;;  %v952_v10 = vsel %vm249_vm0, %v950_v7, %v948_v8 }
 0x415   : > { %965 = vrot.lane.b32.xlu1 %v2565_v6, %s2073_s27  ;;  %989 = vrot.lane.b32.xlu0 %v2571_v9, %s2072_s18  ;;  %v2584_v13 = vsel %vm235_vm2, %v2565_v6, %v952_v10  ;;  %v953_v14 = vsel %vm232_vm1, %v2571_v9, %v946_v12  ;;  %v1025_v36 = vrot.slane %v2571_v9, 4 }
 0x416   : > { %v1026_v43 = vrot.slane %v2584_v13, 4  ;;  %v1007_v44 = vrot.slane %v953_v14, 4 }
 0x417   : > { %v976_v11 = vpop.permute.xlu1 %975  ;;  %v974_v16 = vpop.permute.xlu0 %973 }
 0x418   : > { %v977_v21 = vsel %vm260_vm3, %v974_v16, %v976_v11  ;;  %v978_v22 = vsel %vm260_vm3, %v976_v11, %v974_v16 }
 0x419   : > { %991 = vrot.lane.b32.xlu1 %v2584_v13, %s2072_s18  ;;  %957 = vrot.lane.b32.xlu0 %v953_v14, %s2072_s18 }
 0x41b   : > { %v982_v17 = vpop.permute.xlu1 %981  ;;  %v980_v18 = vpop.permute.xlu0 %979 }
 0x41c   : > { %v983_v19 = vsel %vm267_vm4, %v980_v18, %v982_v17  ;;  %v984_v20 = vsel %vm267_vm4, %v982_v17, %v980_v18 }
 0x41d   : > { %997 = vrot.lane.b32.xlu1 %v2584_v13, %s2073_s27  ;;  %963 = vrot.lane.b32.xlu0 %v953_v14, %s2073_s27  ;;  %v987_v24 = vsel %vm2327_vm5, %v978_v22, %v983_v19  ;;  %v988_v25 = vsel %vm2335_vm7, %v977_v21, %v984_v20  ;;  %v985_v2 = vsel %vm2356_vm9, %v983_v19, %v978_v22 }
 0x41e   : > { %v1019_v59 = vrot.slane %v987_v24, 4  ;;  %v1020_v26 = vrot.slane %v988_v25, 4  ;;  %v986_v48 = vsel %vm2364_vm10, %v984_v20, %v977_v21  ;;  %v1013_v45 = vrot.slane %v985_v2, 4 }
 0x41f   : > { %v1014_v49 = vrot.slane %v986_v48, 4 }
 0x420   : > { %v2613_v30 = vsel %vm330_vm8, %v940_v41, %v1020_v26  ;;  %v2616_v31 = vsel %vm330_vm8, %v939_v35, %v1019_v59 }
 0x421   : > { %995 = vrot.lane.b32.xlu0 %v2571_v9, %s2073_s27  ;;  %v1055_v4 = vand.u32 4294901760, %v2613_v30  ;;  %v1057_v5 = vand.u32 4294901760, %v2616_v31 }
 0x423   : > { %v2628_v37 = vsub.f32 %v2613_v30, %v1055_v4  ;;  %v2633_v39 = vsub.f32 %v2616_v31, %v1057_v5 }
 0x425   : > { %v1159_v51 = vand.u32 4294901760, %v2628_v37  ;;  %v1165_v55 = vand.u32 4294901760, %v2633_v39 }
 0x483   : > { %v960_v29 = vpop.permute.xlu1 %959 }
 0x487   : > { %v990_v53 = vpop.permute.xlu0 %989  ;;  %v966_v54 = vpop.permute.xlu1 %965 }
 0x48b   : > { %v958_v63 = vpop.permute.xlu0 %957  ;;  %v992_v60 = vpop.permute.xlu1 %991 }
 0x48c   : > { %v961_v33 = vsel %vm260_vm3, %v958_v63, %v960_v29  ;;  %v962_v56 = vsel %vm260_vm3, %v960_v29, %v958_v63  ;;  %v993_v8 = vsel %vm260_vm3, %v990_v53, %v992_v60  ;;  %v994_v9 = vsel %vm260_vm3, %v992_v60, %v990_v53 }
 0x48f   : > { %v964_v50 = vpop.permute.xlu0 %963  ;;  %v998_v10 = vpop.permute.xlu1 %997 }
 0x490   : > { %v967_v57 = vsel %vm267_vm4, %v964_v50, %v966_v54  ;;  %v968_v61 = vsel %vm267_vm4, %v966_v54, %v964_v50 }
 0x491   : > { %v969_v62 = vsel %vm2356_vm9, %v967_v57, %v962_v56  ;;  %v970_v1 = vsel %vm2364_vm10, %v968_v61, %v961_v33  ;;  %v971_v41 = vsel %vm2327_vm5, %v962_v56, %v967_v57  ;;  %v972_v35 = vsel %vm2335_vm7, %v961_v33, %v968_v61 }
 0x492   : > { %v1029_v38 = vsel %vm330_vm8, %v969_v62, %v1007_v44  ;;  %v1030_v46 = vsel %vm330_vm8, %v970_v1, %v1008_v58  ;;  %v1031_v6 = vsel %vm330_vm8, %v971_v41, %v1013_v45  ;;  %v1032_v7 = vsel %vm330_vm8, %v972_v35, %v1014_v49 }
 0x493   : > { %v996_v12 = vpop.permute.xlu0 %995  ;;  %v1047_v13 = vand.u32 4294901760, %v1030_v46  ;;  %v1051_v14 = vand.u32 4294901760, %v1032_v7  ;;  %v1049_v17 = vand.u32 4294901760, %v1029_v38  ;;  %v1053_v18 = vand.u32 4294901760, %v1031_v6 }
 0x494   : > { %v999_v11 = vsel %vm267_vm4, %v996_v12, %v998_v10  ;;  %v1000_v16 = vsel %vm267_vm4, %v998_v10, %v996_v12  ;;  %v1126_v35 = vand.u32 4294901760, %v1125_v23 }
 0x495   : > { %v1001_v19 = vsel %vm2356_vm9, %v999_v11, %v994_v9  ;;  %v1002_v20 = vsel %vm2364_vm10, %v1000_v16, %v993_v8  ;;  %v1003_v21 = vsel %vm2327_vm5, %v994_v9, %v999_v11  ;;  %v1004_v22 = vsel %vm2335_vm7, %v993_v8, %v1000_v16 }
 0x496   : > { %v1035_v24 = vsel %vm330_vm8, %v1001_v19, %v1025_v36  ;;  %v1036_v25 = vsel %vm330_vm8, %v1002_v20, %v1026_v43  ;;  %v1042_v3 = vsel %vm330_vm8, %v1003_v21, 0  ;;  %v1045_v59 = vsel %vm330_vm8, %v1004_v22, 0 }
 0x497   : > { %v2686_v26 = vand.u32 4294901760, %v1045_v59  ;;  %v2688_v40 = vpack.c.bf16 %v1051_v14, %v1047_v13  ;;  %v2690_v42 = vsub.f32 %v1030_v46, %v1047_v13  ;;  %v2695_v27 = vsub.f32 %v1032_v7, %v1051_v14 }
 0x498   : > { %v2697_v28 = vpack.c.bf16 %v1053_v18, %v1049_v17  ;;  %v2699_v29 = vsub.f32 %v1029_v38, %v1049_v17  ;;  %v2701_v32 = vsub.f32 %v1031_v6, %v1053_v18  ;;  %v2703_v53 = vand.u32 4294901760, %v1042_v3 }
 0x499   : > { %v2706_v54 = vsub.f32 %v1045_v59, %v2686_v26  ;;  %1804 = vmatprep.subr.bf16.mxu1 %v2688_v40  ;;  %v1059_v63 = vand.u32 4294901760, %v1036_v25  ;;  %v1061_v2 = vand.u32 4294901760, %v1035_v24  ;;  %v1135_v48 = vand.u32 4294901760, %v2690_v42 }
 0x49a   : > { %1806 = vmatpush1.bf16.msra.mxu1 %v2697_v28  ;;  %v1147_v58 = vand.u32 4294901760, %v2695_v27  ;;  %v1141_v60 = vand.u32 4294901760, %v2699_v29  ;;  %v1153_v36 = vand.u32 4294901760, %v2701_v32  ;;  %v1166_v7 = vsub.f32 %v2633_v39, %v1165_v55 }
 0x49b   : > { %v2716_v43 = vpack.c.bf16 %v1059_v63, %v1055_v4  ;;  %v2718_v44 = vsub.f32 %v1036_v25, %v1059_v63  ;;  %v2722_v45 = vpack.c.bf16 %v1061_v2, %v1057_v5  ;;  %v2724_v49 = vsub.f32 %v1035_v24, %v1061_v2 }
 0x49c   : > { %v1136_v50 = vsub.f32 %v2690_v42, %v1135_v48  ;;  %v1148_v33 = vsub.f32 %v2695_v27, %v1147_v58  ;;  %v1142_v30 = vsub.f32 %v2699_v29, %v1141_v60  ;;  %v1154_v31 = vsub.f32 %v2701_v32, %v1153_v36 }
 0x49d   : > { %v2739_v4 = vsub.f32 %v1042_v3, %v2703_v53  ;;  %1808 = vmatprep.subr.bf16.mxu1 %v2716_v43  ;;  %v1160_v5 = vsub.f32 %v2628_v37, %v1159_v51  ;;  %v1171_v56 = vand.u32 4294901760, %v2718_v44  ;;  %v1177_v57 = vand.u32 4294901760, %v2724_v49 }
 0x49e   : > { %1810 = vmatpush1.bf16.msra.mxu1 %v2722_v45  ;;  %v1137_v61 = vand.u32 4294901760, %v1136_v50  ;;  %v1149_v62 = vand.u32 4294901760, %v1148_v33  ;;  %v1143_v1 = vand.u32 4294901760, %v1142_v30  ;;  %v1155_v41 = vand.u32 4294901760, %v1154_v31 }
 0x49f   : > { %1064 = vmatprep.subr.mxu1 %v2686_v26  ;;  %v1172_v38 = vsub.f32 %v2718_v44, %v1171_v56  ;;  %v1178_v46 = vsub.f32 %v2724_v49, %v1177_v57  ;;  %v1183_v6 = vand.u32 4294901760, %v2706_v54  ;;  %v1161_v9 = vand.u32 4294901760, %v1160_v5 }
 0x4a0   : > { %v1811_v8 = vpack.c.bf16 %v1149_v62, %v1137_v61  ;;  %v1813_v12 = vpack.c.bf16 %v1155_v41, %v1143_v1  ;;  %v1189_v14 = vand.u32 4294901760, %v2739_v4  ;;  %v1167_v17 = vand.u32 4294901760, %v1166_v7 }
 0x4a1   : > { %v1173_v10 = vand.u32 4294901760, %v1172_v38  ;;  %v1179_v13 = vand.u32 4294901760, %v1178_v46  ;;  %v1184_v16 = vsub.f32 %v2706_v54, %v1183_v6  ;;  %v1819_v22 = vpack.c.bf16 %v2695_v27, %v2690_v42 }
 0x4a2   : > { %1066 = vmatpush1.msra.mxu1 %v2703_v53  ;;  %v1190_v19 = vsub.f32 %v2739_v4, %v1189_v14  ;;  %v1821_v24 = vpack.c.bf16 %v2701_v32, %v2699_v29  ;;  %v1823_v25 = vpack.c.bf16 %v2718_v44, %v2628_v37  ;;  %v1825_v3 = vpack.c.bf16 %v2724_v49, %v2633_v39 }
 0x4a3   : > { %1812 = vmatprep.subr.bf16.mxu1 %v1811_v8  ;;  %1127 = vmatmul.mubr.f32.vlgmr.msra.gmra.mrb[0].mxu1 %v1126_v35  ;;  %v1815_v11 = vpack.c.bf16 %v1173_v10, %v1161_v9  ;;  %v1817_v18 = vpack.c.bf16 %v1179_v13, %v1167_v17  ;;  %v1185_v20 = vand.u32 4294901760, %v1184_v16  ;;  %v1835_v59 = vpack.c.bf16 %v1147_v58, %v1135_v48 }
 0x4a4   : > { %1814 = vmatpush1.bf16.msra.mxu1 %v1813_v12  ;;  %1247 = vmatprep.mubr.f32.mxu1 %v2074_v15  ;;  %v1191_v21 = vand.u32 4294901760, %v1190_v19  ;;  %v1837_v23 = vpack.c.bf16 %v1153_v36, %v1141_v60  ;;  %v1841_v42 = vpack.c.bf16 %v1177_v57, %v1165_v55 }
 0x4a5   : > { %1816 = vmatprep.subr.bf16.mxu1 %v1815_v11 }
 0x4a8   : > { %1818 = vmatpush1.bf16.msra.mxu1 %v1817_v18 }
 0x4a9   : > { %1186 = vmatprep.subr.mxu1 %v1185_v20 }
 0x4ac   : > { %1192 = vmatpush1.msra.mxu1 %v1191_v21 }
 0x4ad   : > { %1820 = vmatprep.subr.bf16.mxu1 %v1819_v22  ;;  %1249 = vmatmul.mubr.f32.vlgmr.msra.gmra.mrb[0].mxu1 %v2621_v52 }
 0x4ae   : > { %1822 = vmatpush1.bf16.msra.mxu1 %v1821_v24  ;;  %1339 = vmatprep.mubr.f32.mxu1 %v2074_v15 }
 0x4af   : > { %1824 = vmatprep.subr.bf16.mxu1 %v1823_v25 }
 0x4b2   : > { %1826 = vmatpush1.bf16.msra.mxu1 %v1825_v3 }
 0x4b3   : > { %1281 = vmatprep.subr.mxu1 %v2706_v54  ;;  %v1839_v54 = vpack.c.bf16 %v1171_v56, %v1159_v51 }
 0x4b6   : > { %1284 = vmatpush1.msra.mxu1 %v2739_v4 }
 0x4b7   : > { %1828 = vmatprep.subr.bf16.mxu1 %v2688_v40  ;;  %1342 = vmatmul.mubr.f32.vlgmr.msra.gmra.mrb[0].mxu1 %v2636_v47 }
 0x4b8   : > { %1830 = vmatpush1.bf16.msra.mxu1 %v2697_v28  ;;  %1422 = vmatprep.mubr.f32.mxu1 %v2074_v15 }
 0x4b9   : > { %1832 = vmatprep.subr.bf16.mxu1 %v2716_v43 }
 0x4bc   : > { %1834 = vmatpush1.bf16.msra.mxu1 %v2722_v45 }
 0x4bd   : > { %1365 = vmatprep.subr.mxu1 %v2686_v26 }
 0x4c0   : > { %1367 = vmatpush1.msra.mxu1 %v2703_v53 }
 0x4c1   : > { %1836 = vmatprep.subr.bf16.mxu1 %v1835_v59  ;;  %1426 = vmatmul.mubr.f32.vlgmr.msra.gmra.mrb[0].mxu1 %v1124_v34 }
 0x4c2   : > { %1838 = vmatpush1.bf16.msra.mxu1 %v1837_v23  ;;  %1526 = vmatprep.mubr.f32.mxu1 %v2074_v15 }
 0x4c3   : > { %1840 = vmatprep.subr.bf16.mxu1 %v1839_v54 }
 0x4c6   : > { %1842 = vmatpush1.bf16.msra.mxu1 %v1841_v42 }
 0x4c7   : > { %1467 = vmatprep.subr.mxu1 %v1183_v6 }
 0x4ca   : > { %1471 = vmatpush1.msra.mxu1 %v1189_v14 }
 0x4cb   : > { %1844 = vmatprep.subr.bf16.mxu1 %v2688_v40  ;;  %1528 = vmatmul.mubr.f32.vlgmr.msra.gmra.mrb[0].mxu1 %v2621_v52 }
 0x4cc   : > { %1846 = vmatpush1.bf16.msra.mxu1 %v2697_v28  ;;  %1608 = vmatprep.mubr.f32.mxu1 %v2074_v15 }
 0x4cd   : > { %1848 = vmatprep.subr.bf16.mxu1 %v2716_v43 }
 0x4d0   : > { %1850 = vmatpush1.bf16.msra.mxu1 %v2722_v45 }
 0x4d1   : > { %1551 = vmatprep.subr.mxu1 %v2686_v26 }
 0x4d4   : > { %1553 = vmatpush1.msra.mxu1 %v2703_v53 }
 0x4d5   : > { %1610 = vmatmul.mubr.f32.vlgmr.msra.gmra.mrb[0].mxu1 %v2621_v52 }
 0x5a8   : > { %v1611_v37 = vpop.f32.mrb[0].mxu1 }
 0x5a9   : > { %v1616_v39 = vsel %vm330_vm8, %v1611_v37, 0.0  ;;  %v1613_v47 = vpop.f32.mrb[1].mxu1 }
 0x5aa   : > { %v1617_v34 = vsel %vm330_vm8, %v1613_v47, 0.0 }
 0x5ab   : > { %v1618_v51 = vadd.f32 %v1617_v34, %v1616_v39 }
 0x5ad   : > { %1619 = vadd.xlane.f32.xlu0 %v1618_v51 }
 0x63a   : > { %v1620_v55 = vpop.xlane.xlu0 %1619 }
 0x63b   : > { %v1621_v15 = vmul.f32 0.00390625, %v1620_v55 }
 0x63d   : > { %v1622_v40 = vsub.f32 %v1611_v37, %v1621_v15  ;;  %v1623_v27 = vsub.f32 %v1613_v47, %v1621_v15 }
 0x63f   : > { %v1624_v28 = vmul.f32 %v1622_v40, %v1622_v40  ;;  %v1625_v26 = vmul.f32 %v1623_v27, %v1623_v27 }
 0x641   : > { %v1626_v29 = vsel %vm330_vm8, %v1624_v28, 0.0  ;;  %v1627_v52 = vsel %vm330_vm8, %v1625_v26, 0.0 }
 0x642   : > { %v1628_v32 = vadd.f32 %v1627_v52, %v1626_v29 }
 0x644   : > { %1629 = vadd.xlane.f32.xlu1 %v1628_v32 }
 0x6d1   : > { %v1630_v53 = vpop.xlane.xlu1 %1629 }
 0x6d2   : > { %v1631_v63 = vmul.f32 0.00390625, %v1630_v53 }
 0x6d4   : > { %v1632_v2 = vadd.f32 1e-05, %v1631_v63 }
 0x6d6   : > { %1936 = vrsqrt.f32 %v1632_v2 }
 0x6e0   : > { %v1937_v48 = vpop.eup %1936 }
 0x6e1   : > { %v1634_v58 = vmul.f32 %v1937_v48, %v1622_v40  ;;  %v1635_v60 = vmul.f32 %v1937_v48, %v1623_v27 }
 0x6e3   : > { %v1638_v36 = vcombine.low %v1634_v58, %v1635_v60 }
 0x6e5   : > { %v1640_v43 = vadd.f32 %v1638_v36, %v2251_v0 }
 0x6e7   : > { %1641 = vst [vmem:[%s199_s8] sm:$0xff] %v1640_v43 }
 0x6e8   : > { %2009 = shalt.err (!%p2006_p10)
}
 0x6e9   : > { %s2010_s29 = scalar_lea.hbm %s2815_s24, 128  ;;  %s2014_s22 = scalar_lea.hbm %s2862_s3, 256 }
 0x6ea   : > { %p2011_p1 = scmp.ne.s32.totalorder %s2815_s24, %s2010_s29  ;;  %p2015_p3 = scmp.lt.u32.totalorder %s2815_s24, %s2862_s3 }
 0x6eb   : > { %p2016_p11 = scmp.lt.u32.totalorder %s2014_s22, %s2010_s29  ;;  %p2018_p6 = scmp.lt.u32.totalorder %s2010_s29, %s2815_s24 }
 0x6ec   : > { %p2012_p2 = pnand %p2011_p1, %p2188_p8 }
 0x6ed   : > { %p2017_p4 = por %p2016_p11, %p2015_p3 }
 0x6ee   : > { %p2013_p7 = pneg %p2012_p2 }
 0x6ef   : > { %p2019_p9 = por %p2018_p6, %p2017_p4 }
 0x6f1   : > { %p2020_p12 = pnand %p2019_p9, %p2013_p7 }
 0x6f3   : > { %2023 = shalt.err (!%p2020_p12)
}
 0x6f4   : > { %1877 = dma.vmem_to_hbm [thread:$0]  (%p2188_p8), %s2817_s9, 128, %s2815_s24, %s1643_s25  }
 0x6f5 PF: > { %s1669_s30 = sand.u32 1, %s2054_s12   ;;  %p2889_p13 = scmp.ne.s32.totalorder %s2867_s19, 0 }
 0x6f6   : > { %p2890_p0 = scmp.ge.s32.totalorder %s2066_s15, 2  ;;  %s1670_s4 = scalar_lea.sflag [#allocation4], %s1669_s30 }
 0x6f8   : > { %p1888_p5 = pnand %p2890_p0, %p2889_p13 }
 0x6fa   : > { %2049 = dma.done.wait (!%p1888_p5), %s1670_s4, 128  }
 0x6fb   : > { %2051 = vsyncadd (!%p1888_p5), %s1670_s4, 4294967168  ;;  %p17_p10 = scmp.ge.s32.totalorder %s2144_s23, 4   ;;  %s2891_s12 = smov %s2058_s13 }
 0x6fc   : > { %s2892_s13 = smov %s2062_s14  ;;  %s2893_s14 = smov %s2180_s11 }
 0x6fd   : > { %s2894_s15 = smov %s2144_s23  ;;  %19 = sbr.rel (!%p17_p10) target bundleno = 6 (0x6), region = 81 }
 0x704   :  { %1675 = vsyncpa [#allocation3], 1 }
 0x705   :  { %1677 = vsyncpa [#allocation3 + $0x1], 1 }
 0x706   :  { %1678 = vsyncpa [#allocation6], 1 }
 0x707   :  { %1679 = vsyncpa [#allocation4], 1 }
 0x708   :  { %1681 = vsyncpa [#allocation4 + $0x1], 1 }

</bundles_post_ra>
